<compile_context>
chip_gen: v6e
topology: v6e:2x2x1
jax: 0.10.0
libtpu: 0.0.40
codegen_flags: <defaults>
</compile_context>

<pallas_src>
import functools

import jax
import jax.numpy as jnp
from jax.experimental import pallas as pl
from jax.experimental.pallas import tpu as pltpu

_LANES = 128      # padded hidden width = one vreg of lanes
_SUBLANES = 8


def _round_up(n, m):
    return ((n + m - 1) // m) * m


# --------------------------------------------------------------------------- #
# Kernel
# --------------------------------------------------------------------------- #
def _mlp_kernel(x_ref, p_ref, o_ref, *, dinp, out_dim, hp,
                off_b1, off_w2, off_b2, off_w3):
    """One batch tile: x (TB, dinp) -> o (TB, out_dim); params VMEM-resident."""
    x = x_ref[...]                                                    # (TB, dinp) f32

    # Layer 1: Linear(input_dim, 50) + ReLU (hidden padded to 128 lanes; pads 0).
    h = jnp.dot(x, p_ref[0:dinp, :],
                preferred_element_type=jnp.float32)                   # (TB, 128)
    h = jnp.maximum(h + p_ref[off_b1:off_b1 + 1, :], 0.0)

    # Layer 2: Linear(50, 50) + ReLU. Padded rows/cols of W2 are zero, so the
    # K=128 contraction is exact. b2's padded lane `hidden` holds 1.0, so
    # h[:, hidden] == 1 for every row (constant channel folds b3 in below).
    h = jnp.dot(h, p_ref[off_w2:off_w2 + hp, :],
                preferred_element_type=jnp.float32)                   # (TB, 128)
    h = jnp.maximum(h + p_ref[off_b2:off_b2 + 1, :], 0.0)

    # Layer 3 on the MXU: packed W3 block holds w3[k, j] in rows 0..hidden-1 and
    # b3[j] in row `hidden` (lanes >= out_dim zero), so h2 @ W3_block already
    # includes the bias. Slice the first out_dim lanes and store (TB, out_dim).
    o = jnp.dot(h, p_ref[off_w3:off_w3 + hp, :],
                preferred_element_type=jnp.float32)                   # (TB, 128)
    o_ref[...] = o[:, :out_dim].astype(o_ref.dtype)


# --------------------------------------------------------------------------- #
# Parameter packing (hoistable out of the training step)
# --------------------------------------------------------------------------- #
def pack_params(params, hp=_LANES):
    """Pack all weights/biases into one (p_rows, 128) f32 buffer + static meta."""
    w1, b1, w2, b2, w3, b3 = (params["w1"], params["b1"], params["w2"],
                              params["b2"], params["w3"], params["b3"])
    input_dim, hidden = w1.shape
    out_dim = w3.shape[1]
    assert hidden < hp, "hidden must be <= 127 (one lane reserved for bias fold)"
    assert out_dim <= hp, "output dim must fit in 128 lanes"

    f32 = jnp.float32
    dinp = _round_up(max(input_dim, 1), _SUBLANES)

    def pad_block(a, rows, cols=hp):
        a = a.astype(f32)
        return jnp.pad(a, ((0, rows - a.shape[0]), (0, cols - a.shape[1])))

    w1_blk = pad_block(w1, dinp)                                        # (dinp, 128)
    b1_blk = pad_block(b1.reshape(1, -1), _SUBLANES)                    # (8, 128)
    w2_blk = pad_block(w2, hp)                                          # (128, 128)
    b2_row = pad_block(b2.reshape(1, -1), 1).at[0, hidden].set(1.0)     # const-1 chan
    b2_blk = jnp.pad(b2_row, ((0, _SUBLANES - 1), (0, 0)))              # (8, 128)
    w3_rows = pad_block(w3, hidden)                                     # (hidden, 128)
    b3_row = pad_block(b3.reshape(1, -1), 1)                            # (1, 128)
    w3_blk = jnp.concatenate(
        [w3_rows, b3_row, jnp.zeros((hp - hidden - 1, hp), f32)], axis=0)  # (128, 128)

    packed = jnp.concatenate([w1_blk, b1_blk, w2_blk, b2_blk, w3_blk], axis=0)
    meta = dict(
        dinp=dinp, out_dim=out_dim, hp=hp,
        off_b1=dinp,
        off_w2=dinp + _SUBLANES,
        off_b2=dinp + _SUBLANES + hp,
        off_w3=dinp + 2 * _SUBLANES + hp,
    )
    return packed, meta


# --------------------------------------------------------------------------- #
# Batch tiling
# --------------------------------------------------------------------------- #
def _choose_tile(batch, block_batch):
    """128-aligned tile (8-aligned for tiny batches), >=2 grid steps when possible,
    and batch_pad never overshoots batch by more than ~one alignment unit."""
    align = _LANES if batch >= _LANES else _SUBLANES
    batch_al = _round_up(batch, align)
    n_tiles = max(1, pl.cdiv(batch_al, block_batch))
    if batch_al >= 2 * align:
        n_tiles = max(n_tiles, 2)          # megacore sharding on v7x
    tb = _round_up(pl.cdiv(batch_al, n_tiles), align)
    return tb


# --------------------------------------------------------------------------- #
# Forward
# --------------------------------------------------------------------------- #
def value_model_apply(x, packed, meta, *, block_batch=4096):
    """x: (batch, input_dim) f32; packed/meta from pack_params."""
    batch, input_dim = x.shape
    dinp, out_dim, hp = meta["dinp"], meta["out_dim"], meta["hp"]
    p_rows = packed.shape[0]

    # Pad the feature axis to the 8-row-aligned width used by the packed W1 block.
    if input_dim != dinp:
        x = jnp.pad(x, ((0, 0), (0, dinp - input_dim)))

    tb = _choose_tile(batch, block_batch)
    batch_pad = _round_up(batch, tb)
    if batch_pad != batch:
        x = jnp.pad(x, ((0, batch_pad - batch), (0, 0)))
    grid = (batch_pad // tb,)

    kernel = functools.partial(
        _mlp_kernel, dinp=dinp, out_dim=out_dim, hp=hp,
        off_b1=meta["off_b1"], off_w2=meta["off_w2"],
        off_b2=meta["off_b2"], off_w3=meta["off_w3"])

    out = pl.pallas_call(
        kernel,
        out_shape=jax.ShapeDtypeStruct((batch_pad, out_dim), x.dtype),
        grid=grid,
        in_specs=[
            pl.BlockSpec((tb, dinp), lambda i: (i, 0)),      # batch tile of x
            pl.BlockSpec((p_rows, hp), lambda i: (0, 0)),    # params: DMA'd once
        ],
        out_specs=pl.BlockSpec((tb, out_dim), lambda i: (i, 0)),
        compiler_params=pltpu.CompilerParams(
            dimension_semantics=("parallel",),               # megacore on v7x
            vmem_limit_bytes=32 * 1024 * 1024,
        ),
    )(x, packed)

    return out[:batch, :]                                    # (batch, out_dim)


def value_model_forward(x, params, *, block_batch=4096):
    packed, meta = pack_params(params)
    return value_model_apply(x, packed, meta, block_batch=block_batch)


# --------------------------------------------------------------------------- #
# Init + reference + test
# --------------------------------------------------------------------------- #
def init_params(key, input_dim, output_dim, hidden=50):
    """Deterministic synthetic init (PyTorch-style uniform fan-in bound)."""
    ks = jax.random.split(key, 6)

    def lin(kw, kb, fan_in, fan_out):
        bound = 1.0 / jnp.sqrt(float(fan_in))
        w = jax.random.uniform(kw, (fan_in, fan_out), jnp.float32, -bound, bound)
        b = jax.random.uniform(kb, (1, fan_out), jnp.float32, -bound, bound)
        return w, b

    w1, b1 = lin(ks[0], ks[1], input_dim, hidden)
    w2, b2 = lin(ks[2], ks[3], hidden, hidden)
    w3, b3 = lin(ks[4], ks[5], hidden, output_dim)
    return {"w1": w1, "b1": b1, "w2": w2, "b2": b2, "w3": w3, "b3": b3}


def _reference_forward(x, p):
    h1 = jnp.maximum(x @ p["w1"] + p["b1"], 0.0)
    h2 = jnp.maximum(h1 @ p["w2"] + p["b2"], 0.0)
    return h2 @ p["w3"] + p["b3"]


if __name__ == "__main__":
    key = jax.random.PRNGKey(0)
    k_x, k_x2, k_p = jax.random.split(key, 3)

    input_dim, output_dim = 4, 1             # typical REINFORCE value-net shapes
    params = init_params(k_p, input_dim, output_dim)
    fwd = jax.jit(value_model_forward)       # keep the op fused inside a jitted step

    # Small batch (single tile).
    batch = 8
    x = jax.random.normal(k_x, (batch, input_dim), jnp.float32)
    out = jax.block_until_ready(fwd(x, params))
    ref = _reference_forward(x, params)
    assert out.shape == (batch, output_dim)
    assert jnp.allclose(out, ref, atol=1e-4, rtol=1e-4), "mismatch (small batch)"

    # Larger, non-aligned batch (exercises 2-tile grid + pad/trim path).
    batch2 = 300
    x2 = jax.random.normal(k_x2, (batch2, input_dim), jnp.float32)
    out2 = jax.block_until_ready(fwd(x2, params))
    ref2 = _reference_forward(x2, params)
    assert out2.shape == (batch2, output_dim)
    assert jnp.allclose(out2, ref2, atol=1e-4, rtol=1e-4), "mismatch (tiled batch)"

    print("KERNEL_OK")
</pallas_src>

<mosaic_0001>
module attributes {stable_mosaic.version = 11 : i64} {
  func.func @_mlp_kernel(%arg0: i32, %arg1: memref<8x8xf32, #tpu.memory_space<vmem>>, %arg2: memref<280x128xf32, #tpu.memory_space<vmem>>, %arg3: memref<8x1xf32, #tpu.memory_space<vmem>>) attributes {dimension_semantics = [#tpu.dimension_semantics<parallel>], iteration_bounds = array<i64: 1>, scalar_prefetch = 0 : i64, scratch_operands = 0 : i64, tpu.core_type = #tpu.core_type<tc>, window_params = [{transform_indices = @transform_0, window_bounds = array<i64: 8, 8>}, {pipeline_mode = #tpu.pipeline_mode<synchronous>, transform_indices = @transform_1, window_bounds = array<i64: 280, 128>}, {transform_indices = @transform_2, window_bounds = array<i64: 8, 1>}]} {
    %c0 = arith.constant 0 : index
    %c0_0 = arith.constant 0 : index
    %0 = vector.load %arg1[%c0, %c0_0] : memref<8x8xf32, #tpu.memory_space<vmem>>, vector<8x8xf32>
    %c0_1 = arith.constant 0 : index
    %c0_2 = arith.constant 0 : index
    %1 = vector.load %arg2[%c0_1, %c0_2] : memref<280x128xf32, #tpu.memory_space<vmem>>, vector<8x128xf32>
    %cst = arith.constant dense<0.000000e+00> : vector<8x128xf32>
    %2 = tpu.matmul %0, %1, %cst {dimension_numbers = #tpu.dot_dimension_numbers<[1], [0], [0], [1], [0, 0, 1, 1], [], []>} : vector<8x8xf32>, vector<8x128xf32>, vector<8x128xf32> -> vector<8x128xf32>
    %c8 = arith.constant 8 : index
    %c0_3 = arith.constant 0 : index
    %3 = vector.load %arg2[%c8, %c0_3] : memref<280x128xf32, #tpu.memory_space<vmem>>, vector<1x128xf32>
    %4 = vector.broadcast %3 : vector<1x128xf32> to vector<8x128xf32>
    %5 = arith.addf %2, %4 : vector<8x128xf32>
    %cst_4 = arith.constant 0.000000e+00 : f32
    %6 = vector.broadcast %cst_4 : f32 to vector<8x128xf32>
    %7 = arith.maximumf %5, %6 : vector<8x128xf32>
    %c16 = arith.constant 16 : index
    %c0_5 = arith.constant 0 : index
    %8 = vector.load %arg2[%c16, %c0_5] : memref<280x128xf32, #tpu.memory_space<vmem>>, vector<128x128xf32>
    %cst_6 = arith.constant dense<0.000000e+00> : vector<8x128xf32>
    %9 = tpu.matmul %7, %8, %cst_6 {dimension_numbers = #tpu.dot_dimension_numbers<[1], [0], [0], [1], [0, 0, 1, 1], [], []>} : vector<8x128xf32>, vector<128x128xf32>, vector<8x128xf32> -> vector<8x128xf32>
    %c144 = arith.constant 144 : index
    %c0_7 = arith.constant 0 : index
    %10 = vector.load %arg2[%c144, %c0_7] : memref<280x128xf32, #tpu.memory_space<vmem>>, vector<1x128xf32>
    %11 = vector.broadcast %10 : vector<1x128xf32> to vector<8x128xf32>
    %12 = arith.addf %9, %11 : vector<8x128xf32>
    %cst_8 = arith.constant 0.000000e+00 : f32
    %13 = vector.broadcast %cst_8 : f32 to vector<8x128xf32>
    %14 = arith.maximumf %12, %13 : vector<8x128xf32>
    %c152 = arith.constant 152 : index
    %c0_9 = arith.constant 0 : index
    %15 = vector.load %arg2[%c152, %c0_9] : memref<280x128xf32, #tpu.memory_space<vmem>>, vector<128x128xf32>
    %cst_10 = arith.constant dense<0.000000e+00> : vector<8x128xf32>
    %16 = tpu.matmul %14, %15, %cst_10 {dimension_numbers = #tpu.dot_dimension_numbers<[1], [0], [0], [1], [0, 0, 1, 1], [], []>} : vector<8x128xf32>, vector<128x128xf32>, vector<8x128xf32> -> vector<8x128xf32>
    %17 = vector.extract_strided_slice %16 {offsets = [0, 0], sizes = [8, 1], strides = [1, 1]} : vector<8x128xf32> to vector<8x1xf32>
    %c0_11 = arith.constant 0 : index
    %c0_12 = arith.constant 0 : index
    %18 = vector.load %arg3[%c0_11, %c0_12] : memref<8x1xf32, #tpu.memory_space<vmem>>, vector<8x1xf32>
    tpu.vector_store %arg3[%c0_11, %c0_12], %17 {strides = array<i32>} : memref<8x1xf32, #tpu.memory_space<vmem>>, vector<8x1xf32>,
    return
  }
  func.func @transform_0(%arg0: i32) -> (i32, i32) {
    %c0_i32 = arith.constant 0 : i32
    %c0_i32_0 = arith.constant 0 : i32
    return %arg0, %c0_i32 : i32, i32
  }
  func.func @transform_1(%arg0: i32) -> (i32, i32) {
    %c0_i32 = arith.constant 0 : i32
    %c0_i32_0 = arith.constant 0 : i32
    %c0_i32_1 = arith.constant 0 : i32
    return %c0_i32, %c0_i32_0 : i32, i32
  }
  func.func @transform_2(%arg0: i32) -> (i32, i32) {
    %c0_i32 = arith.constant 0 : i32
    %c0_i32_0 = arith.constant 0 : i32
    return %arg0, %c0_i32 : i32, i32
  }
}

</mosaic_0001>

<bundles_post_ra>
// kernel: value_model_forward.1
= control target key start
LH: loop header
LB: loop body
LE: loop exit
PB: predicated region body
PF: predicated region fallthrough
CT: control target
= control target key end

     0   :  { %vm18_vm0 = vcmask 64512   ;;  %v393_v0 = vmov 0.0   ;;  %vm394_vm1 = vmmov 0   ;;  %vm271_vm2 = vcmask 7168   ;;  %s560_s1 = inlined_call_operand.vmem [shape: f32[280,128], index: 1, kind: input, shape index: {}]   ;;  %s561_s0 = inlined_call_operand.vmem [shape: f32[8,8], index: 0, kind: input, shape index: {}]   ;;  %s562_s2 = inlined_call_operand.vmem [shape: f32[8,1], index: 2, kind: output, shape index: {}]  }
   0x1   :  { %316 = vmatprep.subr.mxu0 %v393_v0  ;;  %v12_v1 = vld [vmem:[%s560_s1] sm:$0xff]  ;;  %318 = vmatprep.mubr.msk.f32.mxu0 %vm394_vm1, %v393_v0  ;;  %v108_v3 = vld [vmem:[%s560_s1 + $0x88] sm:$0xff]  ;;  %v106_v5 = vld [vmem:[%s560_s1 + $0x78] sm:$0xff] }
   0x2   :  { %v11_v2 = vld [vmem:[%s561_s0] sm:$0xff]  ;;  %317 = vmatpush3.msra.mxu0 %v12_v1  ;;  %321 = vmatprep.subr.mxu1 %v393_v0  ;;  %v105_v6 = vld [vmem:[%s560_s1 + $0x70] sm:$0xff]  ;;  %v104_v7 = vld [vmem:[%s560_s1 + $0x68] sm:$0xff] }
   0x3   :  { %v107_v4 = vld [vmem:[%s560_s1 + $0x80] sm:$0xff]  ;;  %319 = vmatmul.mubr.msk.f32.vlgmr.msra.gmra.mxu0 %vm18_vm0, %v11_v2  ;;  %322 = vmatpush3.msra.mxu1 %v108_v3  ;;  %v102_v9 = vld [vmem:[%s560_s1 + $0x58] sm:$0xff]  ;;  %v101_v10 = vld [vmem:[%s560_s1 + $0x50] sm:$0xff] }
   0x4   :  { %323 = vmatprep.subr.mxu1 %v393_v0  ;;  %353 = vmatprep.mubr.msk.f32.mxu1 %vm394_vm1, %v393_v0  ;;  %v103_v8 = vld [vmem:[%s560_s1 + $0x60] sm:$0xff]  ;;  %v100_v11 = vld [vmem:[%s560_s1 + $0x48] sm:$0xff]  ;;  %v98_v13 = vld [vmem:[%s560_s1 + $0x38] sm:$0xff] }
   0x5   :  { %324 = vmatpush3.msra.mxu1 %v107_v4  ;;  %356 = vmatprep.subr.mxu0 %v393_v0  ;;  %v99_v12 = vld [vmem:[%s560_s1 + $0x40] sm:$0xff]  ;;  %v97_v14 = vld [vmem:[%s560_s1 + $0x30] sm:$0xff]  ;;  %v96_v15 = vld [vmem:[%s560_s1 + $0x28] sm:$0xff] }
   0x6   :  { %325 = vmatprep.subr.mxu1 %v393_v0  ;;  %388 = vmatprep.mubr.msk.f32.mxu0 %vm394_vm1, %v393_v0  ;;  %v95_v16 = vld [vmem:[%s560_s1 + $0x20] sm:$0xff]  ;;  %v94_v17 = vld [vmem:[%s560_s1 + $0x18] sm:$0xff]  ;;  %v93_v18 = vld [vmem:[%s560_s1 + $0x10] sm:$0xff] }
   0x7   :  { %326 = vmatpush3.msra.mxu1 %v106_v5  ;;  %v200_v19 = vld [vmem:[%s560_s1 + $0x110] sm:$0xff]  ;;  %v199_v20 = vld [vmem:[%s560_s1 + $0x108] sm:$0xff]  ;;  %v198_v21 = vld [vmem:[%s560_s1 + $0x100] sm:$0xff] }
   0x8   :  { %327 = vmatprep.subr.mxu1 %v393_v0  ;;  %357 = vmatpush3.msra.mxu0 %v200_v19  ;;  %v197_v22 = vld [vmem:[%s560_s1 + $0xf8] sm:$0xff]  ;;  %v196_v23 = vld [vmem:[%s560_s1 + $0xf0] sm:$0xff]  ;;  %v195_v24 = vld [vmem:[%s560_s1 + $0xe8] sm:$0xff] }
   0x9   :  { %328 = vmatpush3.msra.mxu1 %v105_v6  ;;  %358 = vmatprep.subr.mxu0 %v393_v0  ;;  %v194_v25 = vld [vmem:[%s560_s1 + $0xe0] sm:$0xff]  ;;  %v193_v26 = vld [vmem:[%s560_s1 + $0xd8] sm:$0xff]  ;;  %v192_v27 = vld [vmem:[%s560_s1 + $0xd0] sm:$0xff] }
   0xa   :  { %329 = vmatprep.subr.mxu1 %v393_v0  ;;  %359 = vmatpush3.msra.mxu0 %v199_v20  ;;  %v191_v28 = vld [vmem:[%s560_s1 + $0xc8] sm:$0xff]  ;;  %v190_v29 = vld [vmem:[%s560_s1 + $0xc0] sm:$0xff]  ;;  %v189_v30 = vld [vmem:[%s560_s1 + $0xb8] sm:$0xff] }
   0xb   :  { %330 = vmatpush3.msra.mxu1 %v104_v7  ;;  %360 = vmatprep.subr.mxu0 %v393_v0  ;;  %v188_v31 = vld [vmem:[%s560_s1 + $0xb0] sm:$0xff]  ;;  %v277_v32 = vld [vmem:[%s560_s1 + $0x8] ss:$0 sm:$0xff]  ;;  %v186_v38 = vld [vmem:[%s560_s1 + $0xa0] sm:$0xff] }
   0xc   :  { %331 = vmatprep.subr.mxu1 %v393_v0  ;;  %361 = vmatpush3.msra.mxu0 %v198_v21  ;;  %v187_v37 = vld [vmem:[%s560_s1 + $0xa8] sm:$0xff]  ;;  %v185_v39 = vld [vmem:[%s560_s1 + $0x98] sm:$0xff]  ;;  %v279_v40 = vld [vmem:[%s560_s1 + $0x90] ss:$0 sm:$0xff] }
   0xd   :  { %332 = vmatpush3.msra.mxu1 %v103_v8  ;;  %362 = vmatprep.subr.mxu0 %v393_v0 }
   0xe   :  { %333 = vmatprep.subr.mxu1 %v393_v0  ;;  %363 = vmatpush3.msra.mxu0 %v197_v22 }
   0xf   :  { %334 = vmatpush3.msra.mxu1 %v102_v9  ;;  %364 = vmatprep.subr.mxu0 %v393_v0 }
  0x10   :  { %335 = vmatprep.subr.mxu1 %v393_v0  ;;  %365 = vmatpush3.msra.mxu0 %v196_v23 }
  0x11   :  { %336 = vmatpush3.msra.mxu1 %v101_v10  ;;  %366 = vmatprep.subr.mxu0 %v393_v0 }
  0x12   :  { %337 = vmatprep.subr.mxu1 %v393_v0  ;;  %367 = vmatpush3.msra.mxu0 %v195_v24 }
  0x13   :  { %338 = vmatpush3.msra.mxu1 %v100_v11  ;;  %368 = vmatprep.subr.mxu0 %v393_v0 }
  0x14   :  { %339 = vmatprep.subr.mxu1 %v393_v0  ;;  %369 = vmatpush3.msra.mxu0 %v194_v25 }
  0x15   :  { %340 = vmatpush3.msra.mxu1 %v99_v12  ;;  %370 = vmatprep.subr.mxu0 %v393_v0 }
  0x16   :  { %341 = vmatprep.subr.mxu1 %v393_v0  ;;  %371 = vmatpush3.msra.mxu0 %v193_v26 }
  0x17   :  { %342 = vmatpush3.msra.mxu1 %v98_v13  ;;  %372 = vmatprep.subr.mxu0 %v393_v0 }
  0x18   :  { %343 = vmatprep.subr.mxu1 %v393_v0  ;;  %373 = vmatpush3.msra.mxu0 %v192_v27 }
  0x19   :  { %344 = vmatpush3.msra.mxu1 %v97_v14  ;;  %374 = vmatprep.subr.mxu0 %v393_v0 }
  0x1a   :  { %345 = vmatprep.subr.mxu1 %v393_v0  ;;  %375 = vmatpush3.msra.mxu0 %v191_v28 }
  0x1b   :  { %346 = vmatpush3.msra.mxu1 %v96_v15  ;;  %376 = vmatprep.subr.mxu0 %v393_v0 }
  0x1c   :  { %347 = vmatprep.subr.mxu1 %v393_v0  ;;  %377 = vmatpush3.msra.mxu0 %v190_v29 }
  0x1d   :  { %348 = vmatpush3.msra.mxu1 %v95_v16  ;;  %378 = vmatprep.subr.mxu0 %v393_v0 }
  0x1e   :  { %349 = vmatprep.subr.mxu1 %v393_v0  ;;  %379 = vmatpush3.msra.mxu0 %v189_v30 }
  0x1f   :  { %350 = vmatpush3.msra.mxu1 %v94_v17  ;;  %380 = vmatprep.subr.mxu0 %v393_v0 }
  0x20   :  { %351 = vmatprep.subr.mxu1 %v393_v0  ;;  %381 = vmatpush3.msra.mxu0 %v188_v31 }
  0x21   :  { %352 = vmatpush3.msra.mxu1 %v93_v18  ;;  %382 = vmatprep.subr.mxu0 %v393_v0 }
  0x22   :  { %383 = vmatpush3.msra.mxu0 %v187_v37 }
  0x23   :  { %384 = vmatprep.subr.mxu0 %v393_v0 }
  0x24   :  { %385 = vmatpush3.msra.mxu0 %v186_v38 }
  0x25   :  { %386 = vmatprep.subr.mxu0 %v393_v0 }
  0x26   :  { %387 = vmatpush3.msra.mxu0 %v185_v39 }
  0xc3   :  { %v88_v33 = vpop.f32.mrf.mxu0 }
  0xc4   :  { %v89_v34 = vadd.f32 %v277_v32, %v88_v33 }
  0xc5   :  { %v320_v35 = vpop.f32.mrf.mxu0 }
  0xc6   :  { %v92_v36 = vmax.f32 %v89_v34, 0.0 }
  0xc8   :  { %354 = vmatmul.mubr.f32.vlgmr.msra.gmra.mxu1 %v92_v36 }
 0x188   :  { %v180_v41 = vpop.f32.mrf.mxu1 }
 0x189   :  { %v181_v42 = vadd.f32 %v279_v40, %v180_v41 }
 0x18a   :  { %v355_v43 = vpop.f32.mrf.mxu1 }
 0x18b   :  { %v184_v44 = vmax.f32 %v181_v42, 0.0 }
 0x18d   :  { %389 = vmatmul.mubr.f32.vlgmr.msra.gmra.mxu0 %v184_v44 }
 0x24d   :  { %v267_v45 = vpop.f32.mrf.mxu0 }
 0x24e   :  { %272 = vst.msk [vmem:[%s562_s2] sm:$0xff] %vm271_vm2, %v267_v45 }
 0x24f   :  { %v390_v46 = vpop.f32.mrf.mxu0 }

</bundles_post_ra>
